<compile_context>
chip_gen: v7x
topology: tpu7x:2x2x1
jax: 0.10.0
libtpu: 0.0.40
codegen_flags: <defaults>
</compile_context>

<pallas_src>
import jax
import jax.numpy as jnp
import numpy as np
from jax.experimental import pallas as pl
from jax.experimental.pallas import tpu as pltpu

# ---- configuration (small synthetic sizes consistent with the module) ----
N = 64                 # number of nodes
C_IN = 32              # in_channels
C_OUT = 32             # out_channels
H = 4                  # num_heads
B = 3                  # num_bases
A = 2                  # number of aggregators: ['add', 'mean']
DH = C_OUT // H        # per-head width (8)
HBA = H * B * A        # comb-weight width (24)
ABD = A * B * DH       # concatenated aggregation width (48)
X = H * A * B * DH     # expanded (h, a, b, d) width (192)
TN = 32                # node tile: grid=(2,) -> one step per v7x TensorCore
E = 256                # number of edges


# ---------------------------- fused Pallas kernel ---------------------------

def egc_fused_kernel(x_ref, adj_ref, wb_ref, wc_ref, bc_ref,
                     mhead_ref, rw_ref, ty_ref, sout_ref, bias_ref, out_ref):
    i = pl.program_id(0)
    row0 = pl.multiple_of(i * TN, TN)

    # ---- bases for ALL source nodes (never written to HBM) -----------------
    x_full = x_ref[...]                                        # [N, C_IN] f32
    bases = jnp.dot(x_full, wb_ref[...],
                    preferred_element_type=jnp.float32)        # [N, B*DH] f32

    # ---- neighborhood aggregation: one bf16 MXU push per dst tile ----------
    adj = adj_ref[...]                                         # [TN, N] bf16 (exact counts)
    agg_add = jnp.dot(adj, bases.astype(jnp.bfloat16),
                      preferred_element_type=jnp.float32)      # [TN, B*DH] f32
    # 'mean' = 'add' / in-degree; in-degree = adjacency row sum (exact ints).
    deg = jnp.sum(adj.astype(jnp.float32), axis=-1, keepdims=True)   # [TN, 1]
    inv_deg = pl.reciprocal(jnp.maximum(deg, 1.0), approx=True)
    agg_mean = agg_add * inv_deg
    agg_cat = jnp.concatenate([agg_add, agg_mean], axis=-1)    # [TN, A*B*DH]=[TN,48]

    # ---- combination weights: Linear + per-head softmax (vectorized) -------
    x_tile = x_ref[pl.ds(row0, TN), :]                         # [TN, C_IN]
    w_all = jnp.dot(x_tile, wc_ref[...],
                    preferred_element_type=jnp.float32) + bc_ref[...]   # [TN, 24]
    # Per-row GLOBAL max: softmax within each head is invariant to subtracting
    # any per-row constant, so no 6-lane per-head slices are needed.
    m = jnp.max(w_all, axis=-1, keepdims=True)
    e = jnp.exp(w_all - m)
    # Per-head sum, broadcast back to all 24 lanes, via block-diag-ones matmul.
    denom = jnp.dot(e, mhead_ref[...], preferred_element_type=jnp.float32)
    w_sm = e * pl.reciprocal(denom, approx=True)               # [TN, 24]

    # ---- head combination as three lane-dense matmuls (no narrow slices) ---
    # z[n, h*DH+d] = sum_{b,a} w_sm[n, h*BA+b*A+a] * agg_cat[n, a*B*DH+b*DH+d]
    w_rep = jnp.dot(w_sm, rw_ref[...], preferred_element_type=jnp.float32)     # [TN, 192]
    y_rep = jnp.dot(agg_cat, ty_ref[...], preferred_element_type=jnp.float32)  # [TN, 192]
    z = jnp.dot(w_rep * y_rep, sout_ref[...],
                preferred_element_type=jnp.float32)            # [TN, C_OUT]
    out_ref[...] = z + bias_ref[...]                           # single full-tile store


# ------------------------------ wrapper -------------------------------------

def build_selection_matrices():
    """Constant 0/1 matrices expressing the per-head softmax sum and the
    H x B x A weighted head combination as lane-dense matmuls."""
    m = np.zeros((HBA, HBA), np.float32)    # per-head all-ones blocks
    r = np.zeros((HBA, X), np.float32)      # weight (h,b,a) -> expanded (h,a,b,d)
    t = np.zeros((ABD, X), np.float32)      # agg   (a,b,d)  -> expanded (h,a,b,d)
    s = np.zeros((X, H * DH), np.float32)   # expanded (h,a,b,d) -> output (h,d)
    for h in range(H):
        for a in range(A):
            for b in range(B):
                for d in range(DH):
                    j = ((h * A + a) * B + b) * DH + d
                    r[h * B * A + b * A + a, j] = 1.0
                    t[(a * B + b) * DH + d, j] = 1.0
                    s[j, h * DH + d] = 1.0
    for c in range(HBA):
        for c2 in range(HBA):
            if c // (B * A) == c2 // (B * A):
                m[c, c2] = 1.0
    return (jnp.asarray(m), jnp.asarray(r), jnp.asarray(t), jnp.asarray(s))


def egc_forward(x, adj_bf16, wb, wc, bc, m_head, r_w, t_y, s_out, bias):
    n = x.shape[0]
    assert n % TN == 0, "pad node count to a multiple of TN"  # TODO(synk): masked tail
    grid = (pl.cdiv(n, TN),)
    full = lambda i: (0, 0)
    tile = lambda i: (i, 0)
    return pl.pallas_call(
        egc_fused_kernel,
        out_shape=jax.ShapeDtypeStruct((n, C_OUT), jnp.float32),
        grid=grid,
        in_specs=[
            pl.BlockSpec((n, C_IN), full),       # x (full: bases need all source nodes)
            pl.BlockSpec((TN, n), tile),         # adjacency rows for this dst tile (bf16)
            pl.BlockSpec((C_IN, B * DH), full),  # bases weight
            pl.BlockSpec((C_IN, HBA), full),     # comb weight
            pl.BlockSpec((1, HBA), full),        # comb bias
            pl.BlockSpec((HBA, HBA), full),      # per-head softmax-sum matrix
            pl.BlockSpec((HBA, X), full),        # weight expansion
            pl.BlockSpec((ABD, X), full),        # aggregation expansion
            pl.BlockSpec((X, C_OUT), full),      # head-combine reduction
            pl.BlockSpec((1, C_OUT), full),      # layer bias
        ],
        out_specs=pl.BlockSpec((TN, C_OUT), tile),
        compiler_params=pltpu.CompilerParams(
            dimension_semantics=("parallel",)),  # 2 steps -> both v7x TCs busy
    )(x, adj_bf16, wb, wc, bc, m_head, r_w, t_y, s_out, bias)


# ---------------------- pure-JAX reference (checking) -----------------------

def egc_reference(x, adj_add, adj_mean, wb, wc, bc, bias):
    n = x.shape[0]
    bases = x @ wb                                            # [N, B*DH]
    y_add = adj_add @ bases
    y_mean = adj_mean @ bases
    y = jnp.stack([y_add.reshape(n, B, DH),
                   y_mean.reshape(n, B, DH)], axis=2)         # [N, B, A, DH]
    w = (x @ wc + bc).reshape(n, H, B * A)
    m = jnp.max(w, axis=-1, keepdims=True)
    e = jnp.exp(w - m)
    w = (e / jnp.sum(e, axis=-1, keepdims=True)).reshape(n, H, B, A, 1)
    z = (w * y[:, None]).sum(axis=(2, 3)).reshape(n, C_OUT) + bias
    return z


# --------------------------------- main --------------------------------------

if __name__ == "__main__":
    key = jax.random.PRNGKey(0)
    k_x, k_src, k_dst, k_wb, k_wc, k_bc = jax.random.split(key, 6)

    # node features
    x = jax.random.normal(k_x, (N, C_IN), jnp.float32)

    # random directed graph, edge_index layout [2, E] = (src; dst)
    src = jax.random.randint(k_src, (E,), 0, N)
    dst = jax.random.randint(k_dst, (E,), 0, N)

    # dense adjacency: adj_add[t, s] = #edges s -> t   (scatter 'add')
    adj_add = jnp.zeros((N, N), jnp.float32).at[dst, src].add(1.0)
    deg = jnp.sum(adj_add, axis=1, keepdims=True)
    adj_mean = adj_add / jnp.maximum(deg, 1.0)                # scatter 'mean' (reference)

    # parameters (deterministic init)
    glorot = float(np.sqrt(6.0 / (C_IN + DH)))
    wb = jax.random.uniform(k_wb, (C_IN, B * DH), jnp.float32, -glorot, glorot)
    wc = jax.random.normal(k_wc, (C_IN, HBA), jnp.float32) * 0.1
    bc = jax.random.normal(k_bc, (1, HBA), jnp.float32) * 0.1
    bias = jnp.zeros((1, C_OUT), jnp.float32)                 # zeros(), as in reset_parameters

    m_head, r_w, t_y, s_out = build_selection_matrices()

    # bf16 adjacency: entries are small integer edge counts -> exact in bf16;
    # the 'mean' normalization is applied in f32 inside the kernel.
    adj_bf16 = adj_add.astype(jnp.bfloat16)

    z = jax.block_until_ready(
        egc_forward(x, adj_bf16, wb, wc, bc, m_head, r_w, t_y, s_out, bias))
    z_ref = egc_reference(x, adj_add, adj_mean, wb, wc, bc, bias)

    assert z.shape == (N, C_OUT) and z.dtype == jnp.float32
    # Tolerance covers bf16 MXU inputs on the aggregation matmul + approx
    # reciprocal in the softmax normalization (kernel) vs. a pure-f32 reference.
    np.testing.assert_allclose(np.asarray(z), np.asarray(z_ref),
                               rtol=2e-2, atol=2e-2)
    print("KERNEL_OK")
</pallas_src>

<mosaic_0001>
module attributes {stable_mosaic.version = 11 : i64} {
  func.func @egc_fused_kernel(%arg0: i32, %arg1: memref<64x32xf32, #tpu.memory_space<vmem>>, %arg2: memref<32x64xbf16, #tpu.memory_space<vmem>>, %arg3: memref<32x24xf32, #tpu.memory_space<vmem>>, %arg4: memref<32x24xf32, #tpu.memory_space<vmem>>, %arg5: memref<1x24xf32, #tpu.memory_space<vmem>>, %arg6: memref<24x24xf32, #tpu.memory_space<vmem>>, %arg7: memref<24x192xf32, #tpu.memory_space<vmem>>, %arg8: memref<48x192xf32, #tpu.memory_space<vmem>>, %arg9: memref<192x32xf32, #tpu.memory_space<vmem>>, %arg10: memref<1x32xf32, #tpu.memory_space<vmem>>, %arg11: memref<32x32xf32, #tpu.memory_space<vmem>>) attributes {dimension_semantics = [#tpu.dimension_semantics<parallel>], iteration_bounds = array<i64: 2>, scalar_prefetch = 0 : i64, scratch_operands = 0 : i64, tpu.core_type = #tpu.core_type<tc>, window_params = [{pipeline_mode = #tpu.pipeline_mode<synchronous>, transform_indices = @transform_0, window_bounds = array<i64: 64, 32>}, {transform_indices = @transform_1, window_bounds = array<i64: 32, 64>}, {pipeline_mode = #tpu.pipeline_mode<synchronous>, transform_indices = @transform_2, window_bounds = array<i64: 32, 24>}, {pipeline_mode = #tpu.pipeline_mode<synchronous>, transform_indices = @transform_3, window_bounds = array<i64: 32, 24>}, {pipeline_mode = #tpu.pipeline_mode<synchronous>, transform_indices = @transform_4, window_bounds = array<i64: 1, 24>}, {pipeline_mode = #tpu.pipeline_mode<synchronous>, transform_indices = @transform_5, window_bounds = array<i64: 24, 24>}, {pipeline_mode = #tpu.pipeline_mode<synchronous>, transform_indices = @transform_6, window_bounds = array<i64: 24, 192>}, {pipeline_mode = #tpu.pipeline_mode<synchronous>, transform_indices = @transform_7, window_bounds = array<i64: 48, 192>}, {pipeline_mode = #tpu.pipeline_mode<synchronous>, transform_indices = @transform_8, window_bounds = array<i64: 192, 32>}, {pipeline_mode = #tpu.pipeline_mode<synchronous>, transform_indices = @transform_9, window_bounds = array<i64: 1, 32>}, {transform_indices = @transform_10, window_bounds = array<i64: 32, 32>}]} {
    %c32_i32 = arith.constant 32 : i32
    %0 = arith.muli %arg0, %c32_i32 : i32
    %1 = tpu.assume_multiple %0, 32 : i32
    %c0 = arith.constant 0 : index
    %c0_0 = arith.constant 0 : index
    %2 = vector.load %arg1[%c0, %c0_0] : memref<64x32xf32, #tpu.memory_space<vmem>>, vector<64x32xf32>
    %c0_1 = arith.constant 0 : index
    %c0_2 = arith.constant 0 : index
    %3 = vector.load %arg3[%c0_1, %c0_2] : memref<32x24xf32, #tpu.memory_space<vmem>>, vector<32x24xf32>
    %cst = arith.constant dense<0.000000e+00> : vector<64x24xf32>
    %4 = tpu.matmul %2, %3, %cst {dimension_numbers = #tpu.dot_dimension_numbers<[1], [0], [0], [1], [0, 0, 1, 1], [], []>} : vector<64x32xf32>, vector<32x24xf32>, vector<64x24xf32> -> vector<64x24xf32>
    %c0_3 = arith.constant 0 : index
    %c0_4 = arith.constant 0 : index
    %5 = vector.load %arg2[%c0_3, %c0_4] : memref<32x64xbf16, #tpu.memory_space<vmem>>, vector<32x64xbf16>
    %6 = arith.truncf %4 : vector<64x24xf32> to vector<64x24xbf16>
    %cst_5 = arith.constant dense<0.000000e+00> : vector<32x24xf32>
    %7 = tpu.matmul %5, %6, %cst_5 {dimension_numbers = #tpu.dot_dimension_numbers<[1], [0], [0], [1], [0, 0, 1, 1], [], []>} : vector<32x64xbf16>, vector<64x24xbf16>, vector<32x24xf32> -> vector<32x24xf32>
    %8 = arith.extf %5 : vector<32x64xbf16> to vector<32x64xf32>
    %cst_6 = arith.constant dense<0.000000e+00> : vector<32xf32>
    %9 = vector.multi_reduction <add>, %8, %cst_6 [1] : vector<32x64xf32> to vector<32xf32>
    %10 = vector.shape_cast %9 : vector<32xf32> to vector<32x1xf32>
    %cst_7 = arith.constant 1.000000e+00 : f32
    %11 = vector.broadcast %cst_7 : f32 to vector<32x1xf32>
    %12 = arith.maximumf %10, %11 : vector<32x1xf32>
    %13 = tpu.reciprocal %12 {approx = true} : vector<32x1xf32> -> vector<32x1xf32>
    %14 = vector.broadcast %13 : vector<32x1xf32> to vector<32x24xf32>
    %15 = arith.mulf %7, %14 : vector<32x24xf32>
    %16 = tpu.concatenate %7, %15 in 1 : vector<32x24xf32>, vector<32x24xf32> -> vector<32x48xf32>
    %17 = arith.index_cast %1 : i32 to index
    %c0_8 = arith.constant 0 : index
    %18 = vector.load %arg1[%17, %c0_8] : memref<64x32xf32, #tpu.memory_space<vmem>>, vector<32x32xf32>
    %c0_9 = arith.constant 0 : index
    %c0_10 = arith.constant 0 : index
    %19 = vector.load %arg4[%c0_9, %c0_10] : memref<32x24xf32, #tpu.memory_space<vmem>>, vector<32x24xf32>
    %cst_11 = arith.constant dense<0.000000e+00> : vector<32x24xf32>
    %20 = tpu.matmul %18, %19, %cst_11 {dimension_numbers = #tpu.dot_dimension_numbers<[1], [0], [0], [1], [0, 0, 1, 1], [], []>} : vector<32x32xf32>, vector<32x24xf32>, vector<32x24xf32> -> vector<32x24xf32>
    %c0_12 = arith.constant 0 : index
    %c0_13 = arith.constant 0 : index
    %21 = vector.load %arg5[%c0_12, %c0_13] : memref<1x24xf32, #tpu.memory_space<vmem>>, vector<1x24xf32>
    %22 = vector.broadcast %21 : vector<1x24xf32> to vector<32x24xf32>
    %23 = arith.addf %20, %22 : vector<32x24xf32>
    %cst_14 = arith.constant dense<0xFF800000> : vector<32xf32>
    %24 = vector.multi_reduction <maximumf>, %23, %cst_14 [1] : vector<32x24xf32> to vector<32xf32>
    %25 = vector.shape_cast %24 : vector<32xf32> to vector<32x1xf32>
    %26 = vector.broadcast %25 : vector<32x1xf32> to vector<32x24xf32>
    %27 = arith.subf %23, %26 : vector<32x24xf32>
    %28 = math.exp %27 : vector<32x24xf32>
    %c0_15 = arith.constant 0 : index
    %c0_16 = arith.constant 0 : index
    %29 = vector.load %arg6[%c0_15, %c0_16] : memref<24x24xf32, #tpu.memory_space<vmem>>, vector<24x24xf32>
    %cst_17 = arith.constant dense<0.000000e+00> : vector<32x24xf32>
    %30 = tpu.matmul %28, %29, %cst_17 {dimension_numbers = #tpu.dot_dimension_numbers<[1], [0], [0], [1], [0, 0, 1, 1], [], []>} : vector<32x24xf32>, vector<24x24xf32>, vector<32x24xf32> -> vector<32x24xf32>
    %31 = tpu.reciprocal %30 {approx = true} : vector<32x24xf32> -> vector<32x24xf32>
    %32 = arith.mulf %28, %31 : vector<32x24xf32>
    %c0_18 = arith.constant 0 : index
    %c0_19 = arith.constant 0 : index
    %33 = vector.load %arg7[%c0_18, %c0_19] : memref<24x192xf32, #tpu.memory_space<vmem>>, vector<24x192xf32>
    %cst_20 = arith.constant dense<0.000000e+00> : vector<32x192xf32>
    %34 = tpu.matmul %32, %33, %cst_20 {dimension_numbers = #tpu.dot_dimension_numbers<[1], [0], [0], [1], [0, 0, 1, 1], [], []>} : vector<32x24xf32>, vector<24x192xf32>, vector<32x192xf32> -> vector<32x192xf32>
    %c0_21 = arith.constant 0 : index
    %c0_22 = arith.constant 0 : index
    %35 = vector.load %arg8[%c0_21, %c0_22] : memref<48x192xf32, #tpu.memory_space<vmem>>, vector<48x192xf32>
    %cst_23 = arith.constant dense<0.000000e+00> : vector<32x192xf32>
    %36 = tpu.matmul %16, %35, %cst_23 {dimension_numbers = #tpu.dot_dimension_numbers<[1], [0], [0], [1], [0, 0, 1, 1], [], []>} : vector<32x48xf32>, vector<48x192xf32>, vector<32x192xf32> -> vector<32x192xf32>
    %37 = arith.mulf %34, %36 : vector<32x192xf32>
    %c0_24 = arith.constant 0 : index
    %c0_25 = arith.constant 0 : index
    %38 = vector.load %arg9[%c0_24, %c0_25] : memref<192x32xf32, #tpu.memory_space<vmem>>, vector<192x32xf32>
    %cst_26 = arith.constant dense<0.000000e+00> : vector<32x32xf32>
    %39 = tpu.matmul %37, %38, %cst_26 {dimension_numbers = #tpu.dot_dimension_numbers<[1], [0], [0], [1], [0, 0, 1, 1], [], []>} : vector<32x192xf32>, vector<192x32xf32>, vector<32x32xf32> -> vector<32x32xf32>
    %c0_27 = arith.constant 0 : index
    %c0_28 = arith.constant 0 : index
    %40 = vector.load %arg10[%c0_27, %c0_28] : memref<1x32xf32, #tpu.memory_space<vmem>>, vector<1x32xf32>
    %41 = vector.broadcast %40 : vector<1x32xf32> to vector<32x32xf32>
    %42 = arith.addf %39, %41 : vector<32x32xf32>
    %c0_29 = arith.constant 0 : index
    %c0_30 = arith.constant 0 : index
    %43 = vector.load %arg11[%c0_29, %c0_30] : memref<32x32xf32, #tpu.memory_space<vmem>>, vector<32x32xf32>
    tpu.vector_store %arg11[%c0_29, %c0_30], %42 {strides = array<i32>} : memref<32x32xf32, #tpu.memory_space<vmem>>, vector<32x32xf32>,
    return
  }
  func.func @transform_0(%arg0: i32) -> (i32, i32) {
    %c0_i32 = arith.constant 0 : i32
    %c0_i32_0 = arith.constant 0 : i32
    %c0_i32_1 = arith.constant 0 : i32
    return %c0_i32, %c0_i32_0 : i32, i32
  }
  func.func @transform_1(%arg0: i32) -> (i32, i32) {
    %c0_i32 = arith.constant 0 : i32
    %c0_i32_0 = arith.constant 0 : i32
    return %arg0, %c0_i32 : i32, i32
  }
  func.func @transform_2(%arg0: i32) -> (i32, i32) {
    %c0_i32 = arith.constant 0 : i32
    %c0_i32_0 = arith.constant 0 : i32
    %c0_i32_1 = arith.constant 0 : i32
    return %c0_i32, %c0_i32_0 : i32, i32
  }
  func.func @transform_3(%arg0: i32) -> (i32, i32) {
    %c0_i32 = arith.constant 0 : i32
    %c0_i32_0 = arith.constant 0 : i32
    %c0_i32_1 = arith.constant 0 : i32
    return %c0_i32, %c0_i32_0 : i32, i32
  }
  func.func @transform_4(%arg0: i32) -> (i32, i32) {
    %c0_i32 = arith.constant 0 : i32
    %c0_i32_0 = arith.constant 0 : i32
    %c0_i32_1 = arith.constant 0 : i32
    return %c0_i32, %c0_i32_0 : i32, i32
  }
  func.func @transform_5(%arg0: i32) -> (i32, i32) {
    %c0_i32 = arith.constant 0 : i32
    %c0_i32_0 = arith.constant 0 : i32
    %c0_i32_1 = arith.constant 0 : i32
    return %c0_i32, %c0_i32_0 : i32, i32
  }
  func.func @transform_6(%arg0: i32) -> (i32, i32) {
    %c0_i32 = arith.constant 0 : i32
    %c0_i32_0 = arith.constant 0 : i32
    %c0_i32_1 = arith.constant 0 : i32
    return %c0_i32, %c0_i32_0 : i32, i32
  }
  func.func @transform_7(%arg0: i32) -> (i32, i32) {
    %c0_i32 = arith.constant 0 : i32
    %c0_i32_0 = arith.constant 0 : i32
    %c0_i32_1 = arith.constant 0 : i32
    return %c0_i32, %c0_i32_0 : i32, i32
  }
  func.func @transform_8(%arg0: i32) -> (i32, i32) {
    %c0_i32 = arith.constant 0 : i32
    %c0_i32_0 = arith.constant 0 : i32
    %c0_i32_1 = arith.constant 0 : i32
    return %c0_i32, %c0_i32_0 : i32, i32
  }
  func.func @transform_9(%arg0: i32) -> (i32, i32) {
    %c0_i32 = arith.constant 0 : i32
    %c0_i32_0 = arith.constant 0 : i32
    %c0_i32_1 = arith.constant 0 : i32
    return %c0_i32, %c0_i32_0 : i32, i32
  }
  func.func @transform_10(%arg0: i32) -> (i32, i32) {
    %c0_i32 = arith.constant 0 : i32
    %c0_i32_0 = arith.constant 0 : i32
    return %arg0, %c0_i32 : i32, i32
  }
}

</mosaic_0001>

<bundles_post_ra>
// kernel: tpu_custom_call.1
= control target key start
LH: loop header
LB: loop body
LE: loop exit
PB: predicated region body
PF: predicated region fallthrough
CT: control target
= control target key end

     0   :  { %s1608_s13 = smov 0   ;;  %s1924_s0 = inlined_call_operand.vmem [shape: f32[64,32], index: 0, kind: input, shape index: {}]   ;;  %s1925_s1 = inlined_call_operand.vmem [shape: bf16[64,64], index: 1, kind: input, shape index: {}]   ;;  %s1926_s2 = inlined_call_operand.vmem [shape: f32[32,24], index: 2, kind: input, shape index: {}]   ;;  %s1927_s3 = inlined_call_operand.vmem [shape: f32[32,24], index: 3, kind: input, shape index: {}]   ;;  %s1928_s4 = inlined_call_operand.vmem [shape: f32[1,24], index: 4, kind: input, shape index: {}]   ;;  %s1929_s5 = inlined_call_operand.vmem [shape: f32[24,24], index: 5, kind: input, shape index: {}]   ;;  %s1930_s6 = inlined_call_operand.vmem [shape: f32[24,192], index: 6, kind: input, shape index: {}]   ;;  %s1931_s7 = inlined_call_operand.vmem [shape: f32[48,192], index: 7, kind: input, shape index: {}]   ;;  %s1932_s8 = inlined_call_operand.vmem [shape: f32[192,32], index: 8, kind: input, shape index: {}]   ;;  %s1933_s9 = inlined_call_operand.vmem [shape: f32[1,32], index: 9, kind: input, shape index: {}]   ;;  %s1934_s10 = inlined_call_operand.vmem [shape: f32[64,32], index: 10, kind: output, shape index: {}]  }
   0x1 LB: > { %s1294_s14 = sadd.s32 4294967295, %s1548_s13   ;;  %p1298_p0 = scmp.ge.s32.totalorder %s1548_s13, 1  ;;  %s1548_s13 = sphi %s1608_s13, %s20_s13  }
   0x2   : > { %p313_p1 = scmp.lt.s32.totalorder %s1548_s13, 3 }
   0x4   : > { %p314_p2 = pnand %p1298_p0, %p313_p1 }
   0x5   : > { %v373_v0 = vld [vmem:[%s1926_s2] sm:$0xff] (!%p314_p2)  ;;  %v374_v1 = vld [vmem:[%s1926_s2 + $0x8] sm:$0xff] (!%p314_p2)  ;;  %v375_v2 = vld [vmem:[%s1926_s2 + $0x10] sm:$0xff] (!%p314_p2)  ;;  %vm377_vm0 = vcmask (!%p314_p2), 261120   ;;  %s1299_s21 = sshll.u32 (!%p314_p2), %s1294_s14, 2  ;;  %vm525_vm1 = vcmask (!%p314_p2), 523264  }
   0x6   : > { %317 = sbr.rel (%p314_p2) target bundleno = 1302 (0x516), region = 60  ;;  %v1431_v3 = vpack.c.bf16 (!%p314_p2), %v374_v1, %v373_v0  ;;  %v376_v4 = vld [vmem:[%s1926_s2 + $0x18] sm:$0xff] (!%p314_p2)  ;;  %v365_v5 = vld [vmem:[%s1924_s0] sm:$0xff] (!%p314_p2)  ;;  %v366_v7 = vld [vmem:[%s1924_s0 + $0x8] sm:$0xff] (!%p314_p2)  ;;  %p352_p3 = scmp.lt.s32.totalorder (!%p314_p2), %s1299_s21, 7  ;;  %vm625_vm2 = vcmask (!%p314_p2), 195584  }
   0x7   : > { %v1435_v6 = vpack.c.bf16 (!%p314_p2), %v376_v4, %v375_v2  ;;  %1381 = vmatprep.mubr.msk.f32.mxu1 (!%p314_p2), %vm377_vm0, %v365_v5  ;;  %v367_v8 = vld [vmem:[%s1924_s0 + $0x10] sm:$0xff] (!%p314_p2)  ;;  %v368_v9 = vld [vmem:[%s1924_s0 + $0x18] sm:$0xff] (!%p314_p2)  ;;  %v369_v10 = vld [vmem:[%s1924_s0 + $0x20] sm:$0xff] (!%p314_p2)  ;;  %s1303_s30 = sshll.u32 (!%p314_p2), %s1294_s14, 5  ;;  %s1551_s16 = smov (!%p314_p2), 24   ;;  %vm994_vm3 = vcmask (!%p314_p2), 392192  }
   0x8   : > { %1432 = vmatprep.subr.bf16.mxu1 (!%p314_p2), %v1431_v3  ;;  %v370_v11 = vld [vmem:[%s1924_s0 + $0x28] sm:$0xff] (!%p314_p2)  ;;  %v371_v12 = vld [vmem:[%s1924_s0 + $0x30] sm:$0xff] (!%p314_p2)  ;;  %v372_v13 = vld [vmem:[%s1924_s0 + $0x38] sm:$0xff] (!%p314_p2)  ;;  %s630_s19 = scalar_lea.vmem (!%p314_p2), %s1924_s0, %s1303_s30 }
   0x9   : > { %1434 = vmatpush3.bf16.msra.mxu1 (!%p314_p2), %v1431_v3  ;;  %v635_v24 = vld [vmem:[%s1927_s3] sm:$0xff] (!%p314_p2)  ;;  %v636_v25 = vld [vmem:[%s1927_s3 + $0x8] sm:$0xff] (!%p314_p2)  ;;  %v637_v31 = vld [vmem:[%s1927_s3 + $0x10] sm:$0xff] (!%p314_p2) }
   0xa   : > { %1436 = vmatprep.subr.bf16.mxu1 (!%p314_p2), %v1435_v6  ;;  %v1439_v30 = vpack.c.bf16 (!%p314_p2), %v636_v25, %v635_v24  ;;  %v638_v32 = vld [vmem:[%s1927_s3 + $0x18] sm:$0xff] (!%p314_p2)  ;;  %v631_v34 = vld [vmem:[%s630_s19] sm:$0xff] (!%p314_p2)  ;;  %v632_v35 = vld [vmem:[%s630_s19 + $0x8] sm:$0xff] (!%p314_p2) }
   0xb   : > { %v1443_v33 = vpack.c.bf16 (!%p314_p2), %v638_v32, %v637_v31  ;;  %v633_v36 = vld [vmem:[%s630_s19 + $0x10] sm:$0xff] (!%p314_p2)  ;;  %v634_v37 = vld [vmem:[%s630_s19 + $0x18] sm:$0xff] (!%p314_p2)  ;;  %v1316_v42 = vld [vmem:[%s1928_s4] ss:$0 sm:$0xff] (!%p314_p2) }
   0xc   : > { %v767_v63 = vld [vmem:[%s1929_s5] sm:$0xff] (!%p314_p2)  ;;  %v768_v0 = vld [vmem:[%s1929_s5 + $0x8] sm:$0xff] (!%p314_p2)  ;;  %v769_v2 = vld [vmem:[%s1929_s5 + $0x10] sm:$0xff] (!%p314_p2) }
   0xd   : > { %1438 = vmatpush3.bf16.msra.mxu1 %v1435_v6  ;;  %s1936_s21 = smov (!%p352_p3, %s1299_s21), 7  ;;  %v1447_v1 = vpack.c.bf16 %v768_v0, %v767_v63  ;;  %v983_v3 = vld [vmem:[%s1931_s7 + $0x8] sm:$0xff]  ;;  %v985_v4 = vld [vmem:[%s1931_s7 + $0x18] sm:$0xff] }
   0xe   : > { %s1300_s22 = sshll.u32 %s1936_s21, 2  ;;  %v1455_v5 = vpack.c.bf16 %v985_v4, %v983_v3  ;;  %v880_v0 = vld [vmem:[%s1930_s6 + $0x28] sm:$0xff]  ;;  %s1302_s23 = sshll.u32 %s1936_s21, 3 }
   0xf   : > { %s355_s25 = scalar_lea.vmem %s1925_s1, %s1300_s22  ;;  %s361_s28 = scalar_lea.vmem %s1934_s10, %s1302_s23 }
  0x10   : > { %1382 = vmatmul.mubr.msk.f32.vlgmr.msra.gmra.mrb[0].mxu1 %vm377_vm0, %v366_v7  ;;  %v1668_v14 = vld [vmem:[%s355_s25] sm:$0xff]   ;;  %v509_v28 = vld [vmem:[%s355_s25 + $0x8] sm:$0xff]  }
  0x11   : > { %1384 = vmatprep.mubr.msk.f32.mxu1 %vm377_vm0, %v367_v8  ;;  %v581_v52 = vunpack.c.l.bf16 %v1668_v14  ;;  %v582_v57 = vunpack.c.h.bf16 %v1668_v14  ;;  %v583_v58 = vunpack.c.l.bf16 %v509_v28  ;;  %v584_v61 = vunpack.c.h.bf16 %v509_v28 }
  0x13   : > { %v585_v56 = vsel %vm525_vm1, %v581_v52, 0.0  ;;  %v588_v59 = vsel %vm525_vm1, %v582_v57, 0.0  ;;  %v591_v60 = vsel %vm525_vm1, %v583_v58, 0.0  ;;  %v594_v62 = vsel %vm525_vm1, %v584_v61, 0.0  ;;  %v876_v58 = vld [vmem:[%s1930_s6 + $0x8] sm:$0xff] }
  0x14   : > { %1385 = vmatmul.mubr.msk.f32.gmra.mrb[2].mxu1 %vm377_vm0, %v368_v9 }
  0x15   : > { %1387 = vmatprep.mubr.msk.f32.mxu1 %vm377_vm0, %v369_v10 }
  0x18   : > { %1388 = vmatmul.mubr.msk.f32.gmra.mrb[4].mxu1 %vm377_vm0, %v370_v11 }
  0x19   : > { %1390 = vmatprep.mubr.msk.f32.mxu1 %vm377_vm0, %v371_v12 }
  0x1c   : > { %1391 = vmatmul.mubr.msk.f32.gmra.mrb[6].mxu1 %vm377_vm0, %v372_v13 }
  0x1d   : > { %1401 = vmatprep.mubr.msk.bf16.mxu1 %vm525_vm1, %v1668_v14 }
  0xe3   : > { %v1383_v15 = vpop.f32.mrb[0].mxu1 }
  0xe4   : > { %v468_v16 = vpop.f32.mrb[1].mxu1 }
  0xe5   : > { %v511_v17 = vpack.c.bf16 %v1383_v15, %v468_v16 }
  0xe7   : > { %v1386_v18 = vpop.f32.mrb[2].mxu1  ;;  %1393 = vmatprep.subr.bf16.mxu1 %v511_v17 }
  0xe8   : > { %v478_v19 = vpop.f32.mrb[3].mxu1  ;;  %1394 = vmatpush3.bf16.msra.mxu1 %v511_v17 }
  0xe9   : > { %v512_v20 = vpack.c.bf16 %v1386_v18, %v478_v19 }
  0xeb   : > { %v1389_v21 = vpop.f32.mrb[4].mxu1  ;;  %1395 = vmatprep.subr.bf16.mxu1 %v512_v20 }
  0xec   : > { %v488_v22 = vpop.f32.mrb[5].mxu1  ;;  %1396 = vmatpush3.bf16.msra.mxu1 %v512_v20 }
  0xed   : > { %v513_v23 = vpack.c.bf16 %v1389_v21, %v488_v22  ;;  %v1550_v22 = vmov 0.0  }
  0xee   : > { %957 = vmatprep.mubr.f32.mxu0 %v1550_v22 }
  0xef   : > { %v1392_v26 = vpop.f32.mrb[6].mxu1  ;;  %1397 = vmatprep.subr.bf16.mxu1 %v513_v23 }
  0xf0   : > { %v498_v27 = vpop.f32.mrb[7].mxu1  ;;  %1398 = vmatpush3.bf16.msra.mxu1 %v513_v23 }
  0xf1   : > { %v514_v29 = vpack.c.bf16 %v1392_v26, %v498_v27  ;;  %v982_v26 = vld [vmem:[%s1931_s7] sm:$0xff]  ;;  %v984_v27 = vld [vmem:[%s1931_s7 + $0x10] sm:$0xff] }
  0xf2   : > { %v1457_v32 = vpack.c.bf16 %v984_v27, %v982_v26  ;;  %v1110_v27 = vld [vmem:[%s1932_s8 + $0x30] sm:$0xff] }
  0xf3   : > { %1399 = vmatprep.subr.bf16.mxu1 %v514_v29 }
  0xf4   : > { %1400 = vmatpush3.bf16.msra.mxu1 %v514_v29  ;;  %v987_v29 = vld [vmem:[%s1931_s7 + $0x28] sm:$0xff] }
  0xf5   : > { %1440 = vmatprep.subr.bf16.mxu1 %v1439_v30 }
  0xf7   : > { %1402 = vmatmul.mubr.msk.bf16.vlgmr.msra.gmra.mrb[8].mxu1 %vm525_vm1, %v509_v28 }
  0xf8   : > { %1442 = vmatpush3.bf16.msra.mxu1 %v1439_v30  ;;  %1413 = vmatprep.mubr.msk.f32.mxu1 %vm377_vm0, %v631_v34  ;;  %v989_v30 = vld [vmem:[%s1931_s7 + $0x38] sm:$0xff] }
  0xf9   : > { %1444 = vmatprep.subr.bf16.mxu1 %v1443_v33  ;;  %v1459_v34 = vpack.c.bf16 %v989_v30, %v987_v29 }
  0xfc   : > { %1446 = vmatpush3.bf16.msra.mxu1 %v1443_v33 }
  0xfd   : > { %1448 = vmatprep.subr.bf16.mxu1 %v1447_v1 }
  0xff   : > { %1414 = vmatmul.mubr.msk.f32.vlgmr.msra.gmra.mrb[12].mxu1 %vm377_vm0, %v632_v35  ;;  %v986_v35 = vld [vmem:[%s1931_s7 + $0x20] sm:$0xff] }
 0x100   : > { %1416 = vmatprep.mubr.msk.f32.mxu1 %vm377_vm0, %v633_v36  ;;  %1450 = vmatpush3.bf16.msra.mxu1 %v1447_v1  ;;  %v988_v36 = vld [vmem:[%s1931_s7 + $0x30] sm:$0xff]  ;;  %v879_v1 = vld [vmem:[%s1930_s6 + $0x20] sm:$0xff] }
 0x101   : > { %1423 = vmatprep.subr.mxu1 %v769_v2 }
 0x103   : > { %1417 = vmatmul.mubr.msk.f32.gmra.mrb[14].mxu1 %vm377_vm0, %v634_v37 }
 0x104   : > { %1424 = vmatpush3.msra.mxu1 %v769_v2 }
 0x105   : > { %1456 = vmatprep.subr.bf16.mxu1 %v1455_v5 }
 0x1ca   : > { %v1694_v38 = vpop.f32.mrb[8].mxu1 }
 0x1cb   : > { %v1696_v39 = vpop.f32.mrb[9].mxu1 }
 0x1cc   : > { %v1698_v40 = vpop.f32.mrb[10].mxu1 }
 0x1cd   : > { %v1700_v41 = vpop.f32.mrb[11].mxu1 }
 0x1d2   : > { %v1415_v43 = vpop.f32.mrb[12].mxu1 }
 0x1d3   : > { %v724_v44 = vpop.f32.mrb[13].mxu1  ;;  %v730_v46 = vadd.f32 %v1415_v43, %v1316_v42  ;;  %v993_v43 = vld [vmem:[%s1931_s7 + $0x58] sm:$0xff] }
 0x1d4   : > { %v725_v45 = vadd.f32 %v1316_v42, %v724_v44 }
 0x1d5   : > { %v746_v54 = vsel %vm625_vm2, %v730_v46, -inf }
 0x1d6   : > { %v1418_v47 = vpop.f32.mrb[14].mxu1  ;;  %v743_v48 = vsel %vm625_vm2, %v725_v45, -inf }
 0x1d7   : > { %v734_v49 = vpop.f32.mrb[15].mxu1  ;;  %744 = vmax.xlane.f32.xlu0 %v743_v48  ;;  %v740_v50 = vadd.f32 %v1418_v47, %v1316_v42 }
 0x1d8   : > { %v735_v51 = vadd.f32 %v1316_v42, %v734_v49  ;;  %v991_v42 = vld [vmem:[%s1931_s7 + $0x48] sm:$0xff]  ;;  %v990_v49 = vld [vmem:[%s1931_s7 + $0x40] sm:$0xff] }
 0x1d9   : > { %v752_v55 = vsel %vm625_vm2, %v740_v50, -inf  ;;  %v1463_v48 = vpack.c.bf16 %v993_v43, %v991_v42  ;;  %v1117_v42 = vld [vmem:[%s1932_s8 + $0x68] sm:$0xff] }
 0x1da   : > { %v749_v53 = vsel %vm625_vm2, %v735_v51, -inf }
 0x1db   : > { %750 = vmax.xlane.f32.xlu1 %v749_v53  ;;  %747 = vmax.xlane.f32.xlu0 %v746_v54 }
 0x1df   : > { %753 = vmax.xlane.f32.xlu1 %v752_v55  ;;  %586 = vadd.xlane.f32.xlu0 %v585_v56 }
 0x1e3   : > { %589 = vadd.xlane.f32.xlu1 %v588_v59  ;;  %592 = vadd.xlane.f32.xlu0 %v591_v60  ;;  %v878_v59 = vld [vmem:[%s1930_s6 + $0x18] sm:$0xff]  ;;  %v875_v60 = vld [vmem:[%s1930_s6] sm:$0xff] }
 0x1e4   : > { %v1451_v61 = vpack.c.bf16 %v878_v59, %v876_v58 }
 0x1e6   : > { %1452 = vmatprep.subr.bf16.mxu0 %v1451_v61 }
 0x1e7   : > { %595 = vadd.xlane.f32.xlu1 %v594_v62  ;;  %v877_v62 = vld [vmem:[%s1930_s6 + $0x10] sm:$0xff] }
 0x1e8   : > { %v1453_v63 = vpack.c.bf16 %v877_v62, %v875_v60 }
 0x1ea   : > { %1454 = vmatpush1.bf16.msra.mxu0 %v1453_v63 }
 0x1eb   : > { %897 = vmatprep.subr.mxu0 %v880_v0 }
 0x1ee   : > { %898 = vmatpush1.msra.mxu0 %v879_v1 }
 0x264   : > { %v745_v6 = vpop.xlane.xlu0 %744 }
 0x265   : > { %v755_v7 = vsub.f32 %v725_v45, %v745_v6 }
 0x267   : > { %v759_v8 = vmul.f32 1.442695, %v755_v7 }
 0x268   : > { %v751_v9 = vpop.xlane.xlu1 %750  ;;  %v748_v10 = vpop.xlane.xlu0 %747 }
 0x269   : > { %1518 = vpow2.f32 %v759_v8  ;;  %v757_v11 = vsub.f32 %v735_v51, %v751_v9  ;;  %v756_v12 = vsub.f32 %v730_v46, %v748_v10  ;;  %v1461_v46 = vpack.c.bf16 %v988_v36, %v986_v35  ;;  %v1115_v35 = vld [vmem:[%s1932_s8 + $0x58] sm:$0xff] }
 0x26b   : > { %v763_v13 = vmul.f32 1.442695, %v757_v11  ;;  %v761_v14 = vmul.f32 1.442695, %v756_v12  ;;  %v1552_v12 = vmov 0.0|0.0  }
 0x26c   : > { %v754_v15 = vpop.xlane.xlu1 %753  ;;  %v587_v16 = vpop.xlane.xlu0 %586  ;;  %1467 = vmatprep.subr.bf16.mxu0 %v1552_v12 }
 0x26d   : > { %1520 = vpow2.f32 %v763_v13  ;;  %v758_v17 = vsub.f32 %v740_v50, %v754_v15  ;;  %v597_v18 = vmax.f32 %v587_v16, 1.0  ;;  %v992_v50 = vld [vmem:[%s1931_s7 + $0x50] sm:$0xff]  ;;  %v1105_v13 = vld [vmem:[%s1932_s8 + $0x8] sm:$0xff] }
 0x26e   : > { %1522 = vpow2.f32 %v761_v14  ;;  %v1465_v53 = vpack.c.bf16 %v992_v50, %v990_v49  ;;  %v1106_v16 = vld [vmem:[%s1932_s8 + $0x10] sm:$0xff] }
 0x26f   : > { %v765_v19 = vmul.f32 1.442695, %v758_v17  ;;  %1524 = vrcp.f32 %v597_v18  ;;  %v1107_v17 = vld [vmem:[%s1932_s8 + $0x18] sm:$0xff]  ;;  %v1122_v50 = vld [vmem:[%s1932_s8 + $0x90] sm:$0xff] }
 0x270   : > { %v590_v20 = vpop.xlane.xlu1 %589  ;;  %v593_v21 = vpop.xlane.xlu0 %592 }
 0x271   : > { %1526 = vpow2.f32 %v765_v19  ;;  %v598_v23 = vmax.f32 %v590_v20, 1.0  ;;  %v599_v24 = vmax.f32 %v593_v21, 1.0  ;;  %v1471_v19 = vpack.c.bf16 %v1107_v17, %v1106_v16  ;;  %v1108_v21 = vld [vmem:[%s1932_s8 + $0x20] sm:$0xff] }
 0x273   : > { %v1731_v25 = vpop.eup %1518  ;;  %1528 = vrcp.f32 %v598_v23  ;;  %v1109_v23 = vld [vmem:[%s1932_s8 + $0x28] sm:$0xff] }
 0x274   : > { %v596_v28 = vpop.xlane.xlu1 %595  ;;  %1425 = vmatprep.mubr.msk.f32.mxu1 %vm625_vm2, %v1731_v25  ;;  %1530 = vrcp.f32 %v599_v24 }
 0x275   : > { %v600_v31 = vmax.f32 %v596_v28, 1.0  ;;  %v1111_v28 = vld [vmem:[%s1932_s8 + $0x38] sm:$0xff] }
 0x276   : > { %v1477_v30 = vpack.c.bf16 %v1111_v28, %v1110_v27 }
 0x277   : > { %v1747_v33 = vpop.eup %1520  ;;  %1532 = vrcp.f32 %v600_v31 }
 0x278   : > { %v1755_v37 = vpop.eup %1522 }
 0x279   : > { %v1525_v44 = vpop.eup %1524  ;;  %1426 = vmatmul.mubr.msk.f32.vlgmr.msra.gmra.mrb[16].mxu1 %vm625_vm2, %v1755_v37 }
 0x27a   : > { %1428 = vmatprep.mubr.msk.f32.mxu1 %vm625_vm2, %v1747_v33  ;;  %v605_v45 = vmul.f32 %v1525_v44, %v1696_v39  ;;  %1458 = vmatpush1.bf16.msra.mxu1 %v1457_v32  ;;  %v1112_v32 = vld [vmem:[%s1932_s8 + $0x40] sm:$0xff]  ;;  %v1118_v44 = vld [vmem:[%s1932_s8 + $0x70] sm:$0xff] }
 0x27b   : > { %v1768_v47 = vpop.eup %1526  ;;  %1460 = vmatprep.subr.bf16.mxu1 %v1459_v34 }
 0x27c   : > { %613 = vrot.lane.b32.xlu0 %v605_v45, %s1551_s16  ;;  %v1119_v45 = vld [vmem:[%s1932_s8 + $0x78] sm:$0xff] }
 0x27d   : > { %v1529_v51 = vpop.eup %1528  ;;  %1429 = vmatmul.mubr.msk.f32.gmra.mrb[18].mxu1 %vm625_vm2, %v1768_v47 }
 0x27e   : > { %v606_v52 = vmul.f32 %v1529_v51, %v1700_v41  ;;  %1462 = vmatpush1.bf16.msra.mxu1 %v1461_v46  ;;  %1071 = vmatprep.mubr.f32.mxu1 %v1550_v22  ;;  %v1531_v54 = vpop.eup %1530  ;;  %v1489_v46 = vpack.c.bf16 %v1119_v45, %v1118_v44  ;;  %v1123_v51 = vld [vmem:[%s1932_s8 + $0x98] sm:$0xff] }
 0x27f   : > { %1464 = vmatprep.subr.bf16.mxu1 %v1463_v48  ;;  %v607_v55 = vmul.f32 %v1531_v54, %v1694_v38  ;;  %v1121_v48 = vld [vmem:[%s1932_s8 + $0x88] sm:$0xff] }
 0x280   : > { %615 = vrot.lane.b32.xlu1 %v606_v52, %s1551_s16  ;;  %v1495_v52 = vpack.c.bf16 %v1123_v51, %v1122_v50  ;;  %v1125_v54 = vld [vmem:[%s1932_s8 + $0xa8] sm:$0xff] }
 0x281   : > { %v1533_v56 = vpop.eup %1532 }
 0x282   : > { %1466 = vmatpush1.bf16.msra.mxu1 %v1465_v53  ;;  %v608_v57 = vmul.f32 %v1533_v56, %v1698_v40  ;;  %v1124_v53 = vld [vmem:[%s1932_s8 + $0xa0] sm:$0xff]  ;;  %v1126_v56 = vld [vmem:[%s1932_s8 + $0xb0] sm:$0xff] }
 0x284   : > { %617 = vrot.lane.b32.xlu1 %v607_v55, %s1551_s16  ;;  %v1498_v55 = vpack.c.bf16 %v1125_v54, %v1124_v53 }
 0x288   : > { %619 = vrot.lane.b32.xlu1 %v608_v57, %s1551_s16  ;;  %v1127_v57 = vld [vmem:[%s1932_s8 + $0xb8] sm:$0xff] }
 0x289   : > { %v1501_v58 = vpack.c.bf16 %v1127_v57, %v1126_v56 }
 0x2ee   : > { %v614_v2 = vpop.permute.xlu0 %613 }
 0x2ef   : > { %v626_v3 = vsel %vm625_vm2, %v1696_v39, %v614_v2 }
 0x2f0   : > { %1329 = vmatmul.mubr.msk.f32.vlgmr.msra.gmra.mrb[20].mxu1 %vm994_vm3, %v626_v3 }
 0x2f1   : > { %1077 = vmatprep.mubr.f32.mxu1 %v1550_v22 }
 0x2f2   : > { %v616_v4 = vpop.permute.xlu1 %615 }
 0x2f3   : > { %v627_v5 = vsel %vm625_vm2, %v1700_v41, %v616_v4 }
 0x2f4   : > { %1330 = vmatmul.mubr.msk.f32.gmra.mrb[22].mxu1 %vm994_vm3, %v627_v5 }
 0x2f5   : > { %1083 = vmatprep.mubr.f32.mxu1 %v1550_v22 }
 0x2f6   : > { %v618_v6 = vpop.permute.xlu1 %617 }
 0x2f7   : > { %v628_v7 = vsel %vm625_vm2, %v1694_v38, %v618_v6  ;;  %v1104_v38 = vld [vmem:[%s1932_s8] sm:$0xff] }
 0x2f8   : > { %1331 = vmatmul.mubr.msk.f32.gmra.mrb[24].mxu1 %vm994_vm3, %v628_v7  ;;  %v1468_v14 = vpack.c.bf16 %v1105_v13, %v1104_v38 }
 0x2f9   : > { %1089 = vmatprep.mubr.f32.mxu1 %v1550_v22 }
 0x2fa   : > { %v620_v8 = vpop.permute.xlu1 %619 }
 0x2fb   : > { %v629_v39 = vsel %vm625_vm2, %v1698_v40, %v620_v8 }
 0x2fc   : > { %1332 = vmatmul.mubr.msk.f32.gmra.mrb[26].mxu1 %vm994_vm3, %v629_v39 }
 0x34c   : > { %v1427_v9 = vpop.f32.mrb[16].mxu1 }
 0x34d   : > { %v848_v10 = vpop.f32.mrb[17].mxu1 }
 0x34e   : > { %1534 = vrcp.f32 %v848_v10 }
 0x34f   : > { %1536 = vrcp.f32 %v1427_v9 }
 0x350   : > { %v1430_v41 = vpop.f32.mrb[18].mxu1 }
 0x351   : > { %v858_v11 = vpop.f32.mrb[19].mxu1 }
 0x352   : > { %1538 = vrcp.f32 %v858_v11 }
 0x353   : > { %1540 = vrcp.f32 %v1430_v41 }
 0x358   : > { %v1535_v40 = vpop.eup %1534 }
 0x359   : > { %v871_v15 = vmul.f32 %v1535_v40, %v1731_v25  ;;  %v1537_v18 = vpop.eup %1536  ;;  %v1474_v25 = vpack.c.bf16 %v1109_v23, %v1108_v21 }
 0x35a   : > { %v872_v20 = vmul.f32 %v1537_v18, %v1755_v37  ;;  %v1116_v37 = vld [vmem:[%s1932_s8 + $0x60] sm:$0xff] }
 0x35b   : > { %1325 = vmatmul.mubr.msk.f32.vlgmr.msra.gmra.mrb[0].mxu0 %vm625_vm2, %v871_v15  ;;  %v1486_v43 = vpack.c.bf16 %v1117_v42, %v1116_v37  ;;  %v1333_v15 = vld [vmem:[%s1933_s9] ss:$0 sm:$0xff] }
 0x35c   : > { %963 = vmatprep.mubr.f32.mxu0 %v1550_v22  ;;  %1469 = vmatpush1.bf16.msra.mxu0 %v1468_v14  ;;  %v1539_v24 = vpop.eup %1538 }
 0x35d   : > { %1470 = vmatprep.subr.bf16.mxu0 %v1552_v12  ;;  %v873_v26 = vmul.f32 %v1539_v24, %v1747_v33  ;;  %v1541_v29 = vpop.eup %1540  ;;  %v1113_v33 = vld [vmem:[%s1932_s8 + $0x48] sm:$0xff] }
 0x35e   : > { %v874_v31 = vmul.f32 %v1541_v29, %v1768_v47  ;;  %v1480_v34 = vpack.c.bf16 %v1113_v33, %v1112_v32  ;;  %v1120_v47 = vld [vmem:[%s1932_s8 + $0x80] sm:$0xff] }
 0x35f   : > { %1326 = vmatmul.mubr.msk.f32.gmra.mrb[2].mxu0 %vm625_vm2, %v872_v20  ;;  %v1492_v49 = vpack.c.bf16 %v1121_v48, %v1120_v47 }
 0x360   : > { %969 = vmatprep.mubr.f32.mxu0 %v1550_v22  ;;  %1472 = vmatpush1.bf16.msra.mxu0 %v1471_v19 }
 0x361   : > { %1473 = vmatprep.subr.bf16.mxu0 %v1552_v12 }
 0x363   : > { %1327 = vmatmul.mubr.msk.f32.gmra.mrb[4].mxu0 %vm625_vm2, %v873_v26 }
 0x364   : > { %975 = vmatprep.mubr.f32.mxu0 %v1550_v22  ;;  %1475 = vmatpush1.bf16.msra.mxu0 %v1474_v25  ;;  %v1114_v22 = vld [vmem:[%s1932_s8 + $0x50] sm:$0xff] }
 0x365   : > { %1476 = vmatprep.subr.bf16.mxu0 %v1552_v12  ;;  %v1483_v36 = vpack.c.bf16 %v1115_v35, %v1114_v22 }
 0x367   : > { %1328 = vmatmul.mubr.msk.f32.gmra.mrb[6].mxu0 %vm625_vm2, %v874_v31 }
 0x368   : > { %1478 = vmatpush1.bf16.msra.mxu0 %v1477_v30 }
 0x369   : > { %1479 = vmatprep.subr.bf16.mxu0 %v1552_v12 }
 0x36c   : > { %1481 = vmatpush1.bf16.msra.mxu0 %v1480_v34 }
 0x36d   : > { %1482 = vmatprep.subr.bf16.mxu0 %v1552_v12 }
 0x370   : > { %1484 = vmatpush1.bf16.msra.mxu0 %v1483_v36 }
 0x371   : > { %1485 = vmatprep.subr.bf16.mxu0 %v1552_v12 }
 0x374   : > { %1487 = vmatpush1.bf16.msra.mxu0 %v1486_v43 }
 0x375   : > { %1488 = vmatprep.subr.bf16.mxu0 %v1552_v12 }
 0x378   : > { %1490 = vmatpush1.bf16.msra.mxu0 %v1489_v46 }
 0x379   : > { %1491 = vmatprep.subr.bf16.mxu0 %v1552_v12 }
 0x37c   : > { %1493 = vmatpush1.bf16.msra.mxu0 %v1492_v49 }
 0x37d   : > { %1494 = vmatprep.subr.bf16.mxu0 %v1552_v12 }
 0x380   : > { %1496 = vmatpush1.bf16.msra.mxu0 %v1495_v52 }
 0x381   : > { %1497 = vmatprep.subr.bf16.mxu0 %v1552_v12 }
 0x384   : > { %1499 = vmatpush1.bf16.msra.mxu0 %v1498_v55 }
 0x385   : > { %1500 = vmatprep.subr.bf16.mxu0 %v1552_v12 }
 0x388   : > { %1502 = vmatpush1.bf16.msra.mxu0 %v1501_v58 }
 0x3c3   : > { %v1073_v59 = vpop.f32.mrb[20].mxu1 }
 0x3c4   : > { %v1075_v60 = vpop.f32.mrb[21].mxu1 }
 0x3c7   : > { %v1079_v61 = vpop.f32.mrb[22].mxu1 }
 0x3c8   : > { %v1081_v62 = vpop.f32.mrb[23].mxu1 }
 0x3cb   : > { %v1085_v63 = vpop.f32.mrb[24].mxu1 }
 0x3cc   : > { %v1087_v0 = vpop.f32.mrb[25].mxu1 }
 0x3cf   : > { %v1091_v1 = vpop.f32.mrb[26].mxu1 }
 0x3d0   : > { %v1093_v2 = vpop.f32.mrb[27].mxu1 }
 0x42e   : > { %v959_v3 = vpop.f32.mrb[0].mxu0 }
 0x42f   : > { %v1096_v4 = vmul.f32 %v1073_v59, %v959_v3  ;;  %v961_v5 = vpop.f32.mrb[1].mxu0 }
 0x430   : > { %v1097_v6 = vmul.f32 %v1075_v60, %v961_v5 }
 0x432   : > { %v965_v7 = vpop.f32.mrb[2].mxu0  ;;  %1334 = vmatprep.mubr.msk.f32.mxu0 %vm525_vm1, %v1097_v6 }
 0x433   : > { %v1098_v8 = vmul.f32 %v1079_v61, %v965_v7  ;;  %v967_v39 = vpop.f32.mrb[3].mxu0  ;;  %1212 = vmatmul.mubr.f32.vlgmr.msra.gmra.mrb[8].mxu0 %v1096_v4 }
 0x434   : > { %v1099_v9 = vmul.f32 %v1081_v62, %v967_v39 }
 0x436   : > { %v971_v10 = vpop.f32.mrb[4].mxu0  ;;  %1335 = vmatprep.mubr.msk.f32.mxu0 %vm525_vm1, %v1099_v9 }
 0x437   : > { %v1100_v41 = vmul.f32 %v1085_v63, %v971_v10  ;;  %v973_v11 = vpop.f32.mrb[5].mxu0  ;;  %1217 = vmatmul.mubr.f32.gmra.mrb[10].mxu0 %v1098_v8 }
 0x438   : > { %v1101_v12 = vmul.f32 %v1087_v0, %v973_v11 }
 0x43a   : > { %v977_v38 = vpop.f32.mrb[6].mxu0  ;;  %1336 = vmatprep.mubr.msk.f32.mxu0 %vm525_vm1, %v1101_v12 }
 0x43b   : > { %v1102_v13 = vmul.f32 %v1091_v1, %v977_v38  ;;  %v979_v40 = vpop.f32.mrb[7].mxu0  ;;  %1222 = vmatmul.mubr.f32.gmra.mrb[12].mxu0 %v1100_v41 }
 0x43c   : > { %v1103_v14 = vmul.f32 %v1093_v2, %v979_v40 }
 0x43e   : > { %1337 = vmatprep.mubr.msk.f32.mxu0 %vm525_vm1, %v1103_v14 }
 0x43f   : > { %1227 = vmatmul.mubr.f32.gmra.mrb[14].mxu0 %v1102_v13 }
 0x506   : > { %v1213_v16 = vpop.f32.mrb[8].mxu0 }
 0x507   : > { %v1214_v17 = vadd.f32 %v1333_v15, %v1213_v16  ;;  %v1215_v18 = vpop.f32.mrb[9].mxu0 }
 0x509   : > { %1232 = vst.msk [vmem:[%s361_s28] sm:$0xff] %vm377_vm0, %v1214_v17 }
 0x50a   : > { %v1218_v19 = vpop.f32.mrb[10].mxu0 }
 0x50b   : > { %v1219_v20 = vadd.f32 %v1333_v15, %v1218_v19  ;;  %v1220_v21 = vpop.f32.mrb[11].mxu0 }
 0x50d   : > { %1233 = vst.msk [vmem:[%s361_s28 + $0x8] sm:$0xff] %vm377_vm0, %v1219_v20 }
 0x50e   : > { %v1223_v23 = vpop.f32.mrb[12].mxu0 }
 0x50f   : > { %v1224_v24 = vadd.f32 %v1333_v15, %v1223_v23  ;;  %v1225_v25 = vpop.f32.mrb[13].mxu0 }
 0x511   : > { %1234 = vst.msk [vmem:[%s361_s28 + $0x10] sm:$0xff] %vm377_vm0, %v1224_v24 }
 0x512   : > { %v1228_v26 = vpop.f32.mrb[14].mxu0 }
 0x513   : > { %v1229_v27 = vadd.f32 %v1333_v15, %v1228_v26  ;;  %v1230_v28 = vpop.f32.mrb[15].mxu0 }
 0x515   : > { %1235 = vst.msk [vmem:[%s361_s28 + $0x18] sm:$0xff] %vm377_vm0, %v1229_v27 }
 0x516 PF: > { %s20_s13 = sadd.s32 1, %s1548_s13  }
 0x517   : > { %p17_p4 = scmp.ge.s32.totalorder %s20_s13, 4  }
 0x519   :  { %19 = sbr.rel (!%p17_p4) target bundleno = 1 (0x1), region = 91 }

</bundles_post_ra>
